<compile_context>
chip_gen: v6e
topology: v6e:2x2x1
jax: 0.10.0
libtpu: 0.0.40
codegen_flags: <defaults>
</compile_context>

<pallas_src>
import jax
import jax.numpy as jnp
from jax.experimental import pallas as pl
from jax.experimental.pallas import tpu as pltpu

EPS = 1e-5       # PyTorch BatchNorm1d default eps
LANE = 128       # TPU lane width
SUBLANE = 8      # TPU sublane width


def _round_up(x, m):
    return ((x + m - 1) // m) * m


def _pad_to(x, shape):
    return jnp.pad(x, [(0, s - d) for d, s in zip(x.shape, shape)])


def _pick_tb(B, L, Dp, Hp, budget_bytes=32 << 20):
    """Largest batch tile (multiple of 8) whose double-buffered tiles + resident
    weights fit the VMEM budget (conservative for v7x's 64 MiB VMEM)."""
    weight_bytes = (Dp * Hp + 2 * Hp * Hp + SUBLANE * Hp) * 4
    tb = min(512, _round_up(B, SUBLANE))
    while tb > SUBLANE:
        tile_bytes = tb * (L * Dp + L + Hp) * 4
        if weight_bytes + 2 * tile_bytes <= budget_bytes:
            break
        tb = max(SUBLANE, ((tb // 2) // SUBLANE) * SUBLANE)
    return tb


def doc_tower_kernel(emb_ref, mask_ref, w1_ref, w2_ref, w3_ref, bias_ref, out_ref):
    # emb_ref : (TB, L, Dp)   mask_ref: (TB, L)
    # w1_ref  : (Dp, Hp)  w2/w3: (Hp, Hp)  bias_ref: (3, Hp)  out_ref: (TB, Hp)
    emb = emb_ref[...].astype(jnp.float32)
    mask = mask_ref[...].astype(jnp.float32)

    # torch.mean(passage_embeddings, dim=0) per passage == masked mean over L.
    summed = jnp.sum(emb * mask[:, :, None], axis=1)            # (TB, Dp)  VPU
    count = jnp.sum(mask, axis=1, keepdims=True)                # (TB, 1)
    inv = pl.reciprocal(jnp.maximum(count, 1.0), approx=True)   # EUP, guards count==0
    avg = summed * inv

    # fc1 (BN1 folded) -> relu   (dropout = identity in eval mode)
    x = jnp.dot(avg, w1_ref[...], preferred_element_type=jnp.float32) + bias_ref[0:1, :]
    x = jnp.maximum(x, 0.0)

    # fc2 (BN2 folded) -> relu
    x = jnp.dot(x, w2_ref[...], preferred_element_type=jnp.float32) + bias_ref[1:2, :]
    x = jnp.maximum(x, 0.0)

    # fc3
    out_ref[...] = (jnp.dot(x, w3_ref[...], preferred_element_type=jnp.float32)
                    + bias_ref[2:3, :]).astype(out_ref.dtype)


def doc_tower_forward(emb, mask, p, *, tb=None):
    """emb: (B, L, D) float, mask: (B, L) float, p: dict of parameters.

    Linear weights in `p` are stored pre-transposed as (in, out), so the kernel
    computes x @ W + b (identical math to PyTorch's x @ W.T + b).
    """
    B, L, D = emb.shape
    H = p["w1"].shape[1]

    # ---- Fold eval-mode BatchNorm into fc1 / fc2 (wrapper-time, plain JAX) ----
    s1 = p["g1"] * jax.lax.rsqrt(p["rv1"] + EPS)                # (1, H)
    w1f = p["w1"] * s1
    b1f = (p["b1"] - p["rm1"]) * s1 + p["be1"]
    s2 = p["g2"] * jax.lax.rsqrt(p["rv2"] + EPS)
    w2f = p["w2"] * s2
    b2f = (p["b2"] - p["rm2"]) * s2 + p["be2"]

    # ---- Pad feature dims to lane width, batch to the tile size ----
    Dp = _round_up(D, LANE)
    Hp = _round_up(H, LANE)
    if tb is None:
        tb = _pick_tb(B, L, Dp, Hp)
    Bp = _round_up(B, tb)

    emb_p = _pad_to(emb.astype(jnp.float32), (Bp, L, Dp))
    mask_p = _pad_to(mask.astype(jnp.float32), (Bp, L))
    w1p = _pad_to(w1f, (Dp, Hp))
    w2p = _pad_to(w2f, (Hp, Hp))
    w3p = _pad_to(p["w3"], (Hp, Hp))
    biases = jnp.concatenate(
        [_pad_to(b1f, (1, Hp)), _pad_to(b2f, (1, Hp)), _pad_to(p["b3"], (1, Hp))],
        axis=0)                                                 # (3, Hp)

    # ---- VMEM budget: double-buffered batch tiles + resident weights ----
    tile_bytes = tb * (L * Dp + L + Hp) * 4
    weight_bytes = (Dp * Hp + 2 * Hp * Hp + SUBLANE * Hp) * 4
    vmem_limit = int(min(max(2 * weight_bytes + 4 * tile_bytes, 8 << 20), 48 << 20))

    grid = (Bp // tb,)
    out = pl.pallas_call(
        doc_tower_kernel,
        out_shape=jax.ShapeDtypeStruct((Bp, Hp), jnp.float32),
        grid=grid,
        in_specs=[
            pl.BlockSpec((tb, L, Dp), lambda i: (i, 0, 0)),    # emb: tiled along batch
            pl.BlockSpec((tb, L), lambda i: (i, 0)),           # mask: tiled along batch
            pl.BlockSpec((Dp, Hp), lambda i: (0, 0)),          # w1 (BN folded), resident
            pl.BlockSpec((Hp, Hp), lambda i: (0, 0)),          # w2 (BN folded), resident
            pl.BlockSpec((Hp, Hp), lambda i: (0, 0)),          # w3, resident
            pl.BlockSpec((3, Hp), lambda i: (0, 0)),           # packed biases, resident
        ],
        out_specs=pl.BlockSpec((tb, Hp), lambda i: (i, 0)),
        compiler_params=pltpu.CompilerParams(
            dimension_semantics=("parallel",),
            vmem_limit_bytes=vmem_limit,
        ),
    )(emb_p, mask_p, w1p, w2p, w3p, biases)

    return out[:B, :H]


def ref_forward(emb, mask, p):
    """Pure-JAX reference of the same eval-mode forward (unfolded BN, exact div)."""
    denom = jnp.maximum(mask.sum(axis=1, keepdims=True), 1.0)
    avg = (emb * mask[:, :, None]).sum(axis=1) / denom
    x = avg @ p["w1"] + p["b1"]
    x = (x - p["rm1"]) / jnp.sqrt(p["rv1"] + EPS) * p["g1"] + p["be1"]
    x = jnp.maximum(x, 0.0)
    x = x @ p["w2"] + p["b2"]
    x = (x - p["rm2"]) / jnp.sqrt(p["rv2"] + EPS) * p["g2"] + p["be2"]
    x = jnp.maximum(x, 0.0)
    return x @ p["w3"] + p["b3"]


if __name__ == "__main__":
    # Small shapes consistent with the module.
    B, L, D, H, V = 2, 8, 32, 32, 50   # batch, padded seq, embedding_dim, hidden_size, vocab

    key = jax.random.PRNGKey(0)
    keys = jax.random.split(key, 12)

    # Deterministic synthetic parameters (embedding table + MLP weights).
    emb_table = jax.random.normal(keys[0], (V, D), jnp.float32) * 0.5
    params = {
        # Linear weights stored already transposed: (in, out)
        "w1": jax.random.normal(keys[1], (D, H), jnp.float32) * 0.1,
        "b1": jax.random.normal(keys[2], (1, H), jnp.float32) * 0.01,
        "w2": jax.random.normal(keys[3], (H, H), jnp.float32) * 0.1,
        "b2": jax.random.normal(keys[4], (1, H), jnp.float32) * 0.01,
        "w3": jax.random.normal(keys[5], (H, H), jnp.float32) * 0.1,
        "b3": jax.random.normal(keys[6], (1, H), jnp.float32) * 0.01,
        # BatchNorm1d params / running stats (eval mode), shaped (1, H)
        "g1": jnp.ones((1, H), jnp.float32) + 0.05 * jax.random.normal(keys[7], (1, H)),
        "be1": 0.05 * jax.random.normal(keys[8], (1, H), jnp.float32),
        "rm1": jnp.zeros((1, H), jnp.float32),
        "rv1": jnp.ones((1, H), jnp.float32),
        "g2": jnp.ones((1, H), jnp.float32) + 0.05 * jax.random.normal(keys[9], (1, H)),
        "be2": 0.05 * jax.random.normal(keys[10], (1, H), jnp.float32),
        "rm2": jnp.zeros((1, H), jnp.float32),
        "rv2": jnp.ones((1, H), jnp.float32),
    }

    # Synthetic "tokenized passages": already-mapped token indices + lengths
    # (word2idx lookup is host-side string processing).
    token_idx = jax.random.randint(keys[11], (B, L), 0, V)       # (B, L) int32
    lengths = jnp.array([L, L - 3], dtype=jnp.int32)             # variable-length passages
    mask = (jnp.arange(L)[None, :] < lengths[:, None]).astype(jnp.float32)  # (B, L)

    # Glue: embedding gather in plain JAX.
    emb = emb_table[token_idx]                                   # (B, L, D) f32

    out = doc_tower_forward(emb, mask, params)
    out = jax.block_until_ready(out)

    ref = ref_forward(emb, mask, params)
    assert out.shape == (B, H)
    # Tolerance covers BN folding + approximate (EUP) reciprocal rounding.
    assert jnp.allclose(out, ref, atol=2e-3, rtol=2e-3), "Pallas output mismatch vs reference"

    print("KERNEL_OK")
</pallas_src>

<mosaic_0001>
module attributes {stable_mosaic.version = 11 : i64} {
  func.func @doc_tower_kernel(%arg0: i32, %arg1: memref<8x8x128xf32, #tpu.memory_space<vmem>>, %arg2: memref<8x8xf32, #tpu.memory_space<vmem>>, %arg3: memref<128x128xf32, #tpu.memory_space<vmem>>, %arg4: memref<128x128xf32, #tpu.memory_space<vmem>>, %arg5: memref<128x128xf32, #tpu.memory_space<vmem>>, %arg6: memref<3x128xf32, #tpu.memory_space<vmem>>, %arg7: memref<8x128xf32, #tpu.memory_space<vmem>>) attributes {dimension_semantics = [#tpu.dimension_semantics<parallel>], iteration_bounds = array<i64: 1>, scalar_prefetch = 0 : i64, scratch_operands = 0 : i64, tpu.core_type = #tpu.core_type<tc>, window_params = [{transform_indices = @transform_0, window_bounds = array<i64: 8, 8, 128>}, {transform_indices = @transform_1, window_bounds = array<i64: 8, 8>}, {pipeline_mode = #tpu.pipeline_mode<synchronous>, transform_indices = @transform_2, window_bounds = array<i64: 128, 128>}, {pipeline_mode = #tpu.pipeline_mode<synchronous>, transform_indices = @transform_3, window_bounds = array<i64: 128, 128>}, {pipeline_mode = #tpu.pipeline_mode<synchronous>, transform_indices = @transform_4, window_bounds = array<i64: 128, 128>}, {pipeline_mode = #tpu.pipeline_mode<synchronous>, transform_indices = @transform_5, window_bounds = array<i64: 3, 128>}, {transform_indices = @transform_6, window_bounds = array<i64: 8, 128>}]} {
    %c0 = arith.constant 0 : index
    %c0_0 = arith.constant 0 : index
    %c0_1 = arith.constant 0 : index
    %0 = vector.load %arg1[%c0, %c0_0, %c0_1] : memref<8x8x128xf32, #tpu.memory_space<vmem>>, vector<8x8x128xf32>
    %c0_2 = arith.constant 0 : index
    %c0_3 = arith.constant 0 : index
    %1 = vector.load %arg2[%c0_2, %c0_3] : memref<8x8xf32, #tpu.memory_space<vmem>>, vector<8x8xf32>
    %2 = vector.shape_cast %1 : vector<8x8xf32> to vector<8x8x1xf32>
    %3 = vector.broadcast %2 : vector<8x8x1xf32> to vector<8x8x128xf32>
    %4 = arith.mulf %0, %3 : vector<8x8x128xf32>
    %cst = arith.constant dense<0.000000e+00> : vector<8x128xf32>
    %5 = vector.multi_reduction <add>, %4, %cst [1] : vector<8x8x128xf32> to vector<8x128xf32>
    %cst_4 = arith.constant dense<0.000000e+00> : vector<8xf32>
    %6 = vector.multi_reduction <add>, %1, %cst_4 [1] : vector<8x8xf32> to vector<8xf32>
    %7 = vector.shape_cast %6 : vector<8xf32> to vector<8x1xf32>
    %cst_5 = arith.constant 1.000000e+00 : f32
    %8 = vector.broadcast %cst_5 : f32 to vector<8x1xf32>
    %9 = arith.maximumf %7, %8 : vector<8x1xf32>
    %10 = tpu.reciprocal %9 {approx = true} : vector<8x1xf32> -> vector<8x1xf32>
    %11 = vector.broadcast %10 : vector<8x1xf32> to vector<8x128xf32>
    %12 = arith.mulf %5, %11 : vector<8x128xf32>
    %c0_6 = arith.constant 0 : index
    %c0_7 = arith.constant 0 : index
    %13 = vector.load %arg3[%c0_6, %c0_7] : memref<128x128xf32, #tpu.memory_space<vmem>>, vector<128x128xf32>
    %cst_8 = arith.constant dense<0.000000e+00> : vector<8x128xf32>
    %14 = tpu.matmul %12, %13, %cst_8 {dimension_numbers = #tpu.dot_dimension_numbers<[1], [0], [0], [1], [0, 0, 1, 1], [], []>} : vector<8x128xf32>, vector<128x128xf32>, vector<8x128xf32> -> vector<8x128xf32>
    %c0_9 = arith.constant 0 : index
    %c0_10 = arith.constant 0 : index
    %15 = vector.load %arg6[%c0_9, %c0_10] : memref<3x128xf32, #tpu.memory_space<vmem>>, vector<1x128xf32>
    %16 = vector.broadcast %15 : vector<1x128xf32> to vector<8x128xf32>
    %17 = arith.addf %14, %16 : vector<8x128xf32>
    %cst_11 = arith.constant 0.000000e+00 : f32
    %18 = vector.broadcast %cst_11 : f32 to vector<8x128xf32>
    %19 = arith.maximumf %17, %18 : vector<8x128xf32>
    %c0_12 = arith.constant 0 : index
    %c0_13 = arith.constant 0 : index
    %20 = vector.load %arg4[%c0_12, %c0_13] : memref<128x128xf32, #tpu.memory_space<vmem>>, vector<128x128xf32>
    %cst_14 = arith.constant dense<0.000000e+00> : vector<8x128xf32>
    %21 = tpu.matmul %19, %20, %cst_14 {dimension_numbers = #tpu.dot_dimension_numbers<[1], [0], [0], [1], [0, 0, 1, 1], [], []>} : vector<8x128xf32>, vector<128x128xf32>, vector<8x128xf32> -> vector<8x128xf32>
    %c1 = arith.constant 1 : index
    %c0_15 = arith.constant 0 : index
    %22 = vector.load %arg6[%c1, %c0_15] : memref<3x128xf32, #tpu.memory_space<vmem>>, vector<1x128xf32>
    %23 = vector.broadcast %22 : vector<1x128xf32> to vector<8x128xf32>
    %24 = arith.addf %21, %23 : vector<8x128xf32>
    %cst_16 = arith.constant 0.000000e+00 : f32
    %25 = vector.broadcast %cst_16 : f32 to vector<8x128xf32>
    %26 = arith.maximumf %24, %25 : vector<8x128xf32>
    %c0_17 = arith.constant 0 : index
    %c0_18 = arith.constant 0 : index
    %27 = vector.load %arg5[%c0_17, %c0_18] : memref<128x128xf32, #tpu.memory_space<vmem>>, vector<128x128xf32>
    %cst_19 = arith.constant dense<0.000000e+00> : vector<8x128xf32>
    %28 = tpu.matmul %26, %27, %cst_19 {dimension_numbers = #tpu.dot_dimension_numbers<[1], [0], [0], [1], [0, 0, 1, 1], [], []>} : vector<8x128xf32>, vector<128x128xf32>, vector<8x128xf32> -> vector<8x128xf32>
    %c2 = arith.constant 2 : index
    %c0_20 = arith.constant 0 : index
    %29 = vector.load %arg6[%c2, %c0_20] : memref<3x128xf32, #tpu.memory_space<vmem>>, vector<1x128xf32>
    %30 = vector.broadcast %29 : vector<1x128xf32> to vector<8x128xf32>
    %31 = arith.addf %28, %30 : vector<8x128xf32>
    %c0_21 = arith.constant 0 : index
    %c0_22 = arith.constant 0 : index
    %32 = vector.load %arg7[%c0_21, %c0_22] : memref<8x128xf32, #tpu.memory_space<vmem>>, vector<8x128xf32>
    tpu.vector_store %arg7[%c0_21, %c0_22], %31 {strides = array<i32>} : memref<8x128xf32, #tpu.memory_space<vmem>>, vector<8x128xf32>,
    return
  }
  func.func @transform_0(%arg0: i32) -> (i32, i32, i32) {
    %c0_i32 = arith.constant 0 : i32
    %c0_i32_0 = arith.constant 0 : i32
    %c0_i32_1 = arith.constant 0 : i32
    return %arg0, %c0_i32, %c0_i32_0 : i32, i32, i32
  }
  func.func @transform_1(%arg0: i32) -> (i32, i32) {
    %c0_i32 = arith.constant 0 : i32
    %c0_i32_0 = arith.constant 0 : i32
    return %arg0, %c0_i32 : i32, i32
  }
  func.func @transform_2(%arg0: i32) -> (i32, i32) {
    %c0_i32 = arith.constant 0 : i32
    %c0_i32_0 = arith.constant 0 : i32
    %c0_i32_1 = arith.constant 0 : i32
    return %c0_i32, %c0_i32_0 : i32, i32
  }
  func.func @transform_3(%arg0: i32) -> (i32, i32) {
    %c0_i32 = arith.constant 0 : i32
    %c0_i32_0 = arith.constant 0 : i32
    %c0_i32_1 = arith.constant 0 : i32
    return %c0_i32, %c0_i32_0 : i32, i32
  }
  func.func @transform_4(%arg0: i32) -> (i32, i32) {
    %c0_i32 = arith.constant 0 : i32
    %c0_i32_0 = arith.constant 0 : i32
    %c0_i32_1 = arith.constant 0 : i32
    return %c0_i32, %c0_i32_0 : i32, i32
  }
  func.func @transform_5(%arg0: i32) -> (i32, i32) {
    %c0_i32 = arith.constant 0 : i32
    %c0_i32_0 = arith.constant 0 : i32
    %c0_i32_1 = arith.constant 0 : i32
    return %c0_i32, %c0_i32_0 : i32, i32
  }
  func.func @transform_6(%arg0: i32) -> (i32, i32) {
    %c0_i32 = arith.constant 0 : i32
    %c0_i32_0 = arith.constant 0 : i32
    return %arg0, %c0_i32 : i32, i32
  }
}

</mosaic_0001>

<bundles_post_ra>
// kernel: tpu_custom_call.1
= control target key start
LH: loop header
LB: loop body
LE: loop exit
PB: predicated region body
PF: predicated region fallthrough
CT: control target
= control target key end

     0   :  { %11 = vsyncpa [#allocation3], 0  ;;  %s1002_s0 = inlined_call_operand.hbm [shape: f32[8,8,128], index: 0, kind: input, shape index: {}]   ;;  %s1003_s1 = inlined_call_operand.hbm [shape: f32[8,8], index: 1, kind: input, shape index: {}]   ;;  %s1004_s2 = inlined_call_operand.hbm [shape: f32[128,128], index: 2, kind: input, shape index: {}]   ;;  %s1005_s3 = inlined_call_operand.hbm [shape: f32[128,128], index: 3, kind: input, shape index: {}]   ;;  %s1006_s4 = inlined_call_operand.hbm [shape: f32[128,128], index: 4, kind: input, shape index: {}]   ;;  %s1007_s5 = inlined_call_operand.vmem [shape: f32[3,128], index: 5, kind: input, shape index: {}]   ;;  %s1008_s6 = inlined_call_operand.hbm [shape: f32[8,128], index: 6, kind: output, shape index: {}]  }
   0x1   :  { %12 = vsyncpa [#allocation6], 0 }
   0x2   :  { %13 = vsyncpa [#allocation9], 0 }
   0x3   :  { %14 = vsyncpa [#allocation4], 0  ;;  %s863_s21 = smov [#allocation5]  }
   0x4   :  { %s33_s22 = sshll.u32 %s863_s21, 4  ;;  %s34_s22 = int_to_ptr.vmem [resolvable:$true] %s33_s22 }
   0x5   :  { %s743_s23 = scalar_lea.vmem %s34_s22, 128  ;;  %p748_p1 = scmp.lt.s32.totalorder %s34_s22, %s34_s22 }
   0x6   :  { %p744_p0 = scmp.ne.s32.totalorder %s34_s22, %s743_s23  ;;  %p749_p2 = scmp.lt.s32.totalorder %s743_s23, %s743_s23 }
   0x8   :  { %p750_p3 = por %p749_p2, %p748_p1 }
   0xa   :  { %p751_p4 = pnand %p750_p3, %p744_p0 }
   0xc   :  { %754 = shalt.err (!%p751_p4)
}
   0xd   :  { %36 = dma.hbm_to_vmem [thread:$0]  %s1003_s1, 128, %s34_s22, [#allocation6]  }
   0xe   :  { %s864_s26 = smov [#allocation8]   ;;  %s865_s28 = smov [#allocation2]  }
   0xf   :  { %s54_s27 = sshll.u32 %s864_s26, 4  ;;  %s20_s29 = sshll.u32 %s865_s28, 4  ;;  %s55_s27 = int_to_ptr.vmem [resolvable:$true] %s54_s27  ;;  %s21_s29 = int_to_ptr.vmem [resolvable:$true] %s20_s29 }
  0x10   :  { %s763_s30 = scalar_lea.vmem %s55_s27, 2048  ;;  %p768_p6 = scmp.lt.s32.totalorder %s55_s27, %s55_s27 }
  0x11   :  { %p764_p5 = scmp.ne.s32.totalorder %s55_s27, %s763_s30  ;;  %p769_p7 = scmp.lt.s32.totalorder %s763_s30, %s763_s30 }
  0x13   :  { %p770_p8 = por %p769_p7, %p768_p6 }
  0x15   :  { %p771_p9 = pnand %p770_p8, %p764_p5 }
  0x17   :  { %774 = shalt.err (!%p771_p9)
}
  0x18   :  { %s866_s7 = smov 128   ;;  %s867_s8 = smov 8  }
  0x19   :  { %60 = dma.hbm_to_vmem [thread:$0]  %s1005_s3, 2048, %s55_s27, [#allocation9], %s866_s7, %s866_s7, %s867_s8  }
  0x1a   :  { %s783_s1 = scalar_lea.vmem %s21_s29, 1024  ;;  %p788_p11 = scmp.lt.s32.totalorder %s21_s29, %s21_s29 }
  0x1b   :  { %p784_p10 = scmp.ne.s32.totalorder %s21_s29, %s783_s1  ;;  %p789_p12 = scmp.lt.s32.totalorder %s783_s1, %s783_s1 }
  0x1d   :  { %p790_p13 = por %p789_p12, %p788_p11 }
  0x1f   :  { %p791_p0 = pnand %p790_p13, %p784_p10 }
  0x21   :  { %794 = shalt.err (!%p791_p0)
}
  0x22   :  { %26 = dma.hbm_to_vmem [thread:$0]  %s1002_s0, 1024, %s21_s29, [#allocation3], %s866_s7, %s866_s7, %s867_s8  }
  0x23   :  { %s868_s13 = smov [#allocation7]   ;;  %s869_s15 = smov [#allocation10]  }
  0x24   :  { %s42_s14 = sshll.u32 %s868_s13, 4  ;;  %s66_s3 = sshll.u32 %s869_s15, 4  ;;  %s43_s14 = int_to_ptr.vmem [resolvable:$true] %s42_s14  ;;  %s67_s3 = int_to_ptr.vmem [resolvable:$true] %s66_s3 }
  0x25   :  { %s803_s16 = scalar_lea.vmem %s43_s14, 2048  ;;  %p808_p2 = scmp.lt.s32.totalorder %s43_s14, %s43_s14 }
  0x26   :  { %p804_p1 = scmp.ne.s32.totalorder %s43_s14, %s803_s16  ;;  %p809_p3 = scmp.lt.s32.totalorder %s803_s16, %s803_s16 }
  0x28   :  { %p810_p4 = por %p809_p3, %p808_p2 }
  0x2a   :  { %p811_p5 = pnand %p810_p4, %p804_p1 }
  0x2c   :  { %814 = shalt.err (!%p811_p5)
}
  0x2d   :  { %48 = dma.hbm_to_vmem [thread:$0]  %s1004_s2, 2048, %s43_s14, [#allocation6], %s866_s7, %s866_s7, %s867_s8  }
  0x2e   :  { %s823_s0 = scalar_lea.vmem %s67_s3, 2048  ;;  %p828_p7 = scmp.lt.s32.totalorder %s67_s3, %s67_s3 }
  0x2f   :  { %p824_p6 = scmp.ne.s32.totalorder %s67_s3, %s823_s0  ;;  %p829_p8 = scmp.lt.s32.totalorder %s823_s0, %s823_s0 }
  0x31   :  { %p830_p9 = por %p829_p8, %p828_p7 }
  0x33   :  { %p831_p10 = pnand %p830_p9, %p824_p6 }
  0x35   :  { %834 = shalt.err (!%p831_p10)
}
  0x36   :  { %72 = dma.hbm_to_vmem [thread:$0]  %s1006_s4, 2048, %s67_s3, [#allocation9], %s866_s7, %s866_s7, %s867_s8  }
  0x37   :  { %855 = dma.done.wait [#allocation3], 1024  }
  0x38   :  { %856 = vsyncadd [#allocation3], 4294966272 }
  0x39   :  { %857 = dma.done.wait [#allocation6], 2176  }
  0x3a   :  { %858 = vsyncadd [#allocation6], 4294965120 }
  0x3b   :  { %859 = dma.done.wait [#allocation9], 4096  }
  0x3c   :  { %860 = vsyncadd [#allocation9], 4294963200  ;;  %v99_v0 = vlaneseq  ;;  %vm211_vm0 = vcmask 64512   ;;  %v98_v4 = vld [vmem:[#allocation5] sm:$0xff]  ;;  %v870_v11 = vmov 0.0   ;;  %v255_v15 = vld [vmem:[#allocation7 + $0x70] sm:$0xff] }
  0x3d   :  { %v212_v5 = vsel %vm211_vm0, %v98_v4, 0.0  ;;  %618 = vmatprep.subr.mxu0 %v870_v11  ;;  %v256_v12 = vld [vmem:[#allocation7 + $0x78] sm:$0xff]  ;;  %653 = vmatprep.subr.mxu1 %v870_v11  ;;  %v254_v16 = vld [vmem:[#allocation7 + $0x68] sm:$0xff]  ;;  %v253_v19 = vld [vmem:[#allocation7 + $0x60] sm:$0xff]  ;;  %vm871_vm1 = vmmov 0   ;;  %vm271_vm2 = vcmask 1041409  }
  0x3e   :  { %v100_v1 = vshrl.u32 %v99_v0, 7  ;;  %213 = vadd.xlane.f32.xlu0 %v212_v5  ;;  %619 = vmatpush3.msra.mxu0 %v256_v12  ;;  %v252_v21 = vld [vmem:[#allocation7 + $0x58] sm:$0xff]  ;;  %v251_v24 = vld [vmem:[#allocation7 + $0x50] sm:$0xff]  ;;  %v250_v26 = vld [vmem:[#allocation7 + $0x48] sm:$0xff]  ;;  %vm274_vm3 = vcmask 1042434   ;;  %vm277_vm4 = vcmask 1043459  }
  0x3f   :  { %620 = vmatprep.subr.mxu0 %v870_v11  ;;  %v249_v28 = vld [vmem:[#allocation7 + $0x40] sm:$0xff]  ;;  %v248_v29 = vld [vmem:[#allocation7 + $0x38] sm:$0xff]  ;;  %v247_v30 = vld [vmem:[#allocation7 + $0x30] sm:$0xff]  ;;  %650 = vmatprep.mubr.msk.f32.mxu0 %vm871_vm1, %v870_v11  ;;  %vm280_vm5 = vcmask 1044484   ;;  %vm283_vm6 = vcmask 1045509   ;;  %vm286_vm7 = vcmask 1046534  }
  0x40   :  { %v115_v2 = vsub.s32 2, %v100_v1  ;;  %v101_v3 = vsub.s32 0, %v100_v1  ;;  %v122_v8 = vsub.s32 3, %v100_v1  ;;  %v129_v10 = vsub.s32 4, %v100_v1  ;;  %621 = vmatpush3.msra.mxu0 %v255_v15  ;;  %v246_v31 = vld [vmem:[#allocation7 + $0x28] sm:$0xff]  ;;  %v245_v32 = vld [vmem:[#allocation7 + $0x20] sm:$0xff]  ;;  %685 = vmatprep.mubr.msk.f32.mxu1 %vm871_vm1, %v870_v11 }
  0x41   :  { %v136_v14 = vsub.s32 5, %v100_v1  ;;  %622 = vmatprep.subr.mxu0 %v870_v11  ;;  %v143_v18 = vsub.s32 6, %v100_v1  ;;  %v108_v20 = vsub.s32 1, %v100_v1  ;;  %v150_v23 = vsub.s32 7, %v100_v1  ;;  %v244_v33 = vld [vmem:[#allocation7 + $0x18] sm:$0xff]  ;;  %v243_v34 = vld [vmem:[#allocation7 + $0x10] sm:$0xff] }
  0x42   :  { %v116_v6 = vrot.slane %v98_v4, %v115_v2  ;;  %v102_v7 = vrot.slane %v98_v4, %v101_v3  ;;  %v123_v9 = vrot.slane %v98_v4, %v122_v8  ;;  %v130_v13 = vrot.slane %v98_v4, %v129_v10  ;;  %623 = vmatpush3.msra.mxu0 %v254_v16  ;;  %v242_v35 = vld [vmem:[#allocation7 + $0x8] sm:$0xff]  ;;  %v241_v36 = vld [vmem:[#allocation7] sm:$0xff]  ;;  %v378_v37 = vld [vmem:[#allocation8 + $0x78] sm:$0xff]  ;;  %s872_s25 = smov [#allocation11]  }
  0x43   :  { %v137_v17 = vrot.slane %v98_v4, %v136_v14  ;;  %624 = vmatprep.subr.mxu0 %v870_v11  ;;  %v144_v22 = vrot.slane %v98_v4, %v143_v18  ;;  %v109_v25 = vrot.slane %v98_v4, %v108_v20  ;;  %v151_v27 = vrot.slane %v98_v4, %v150_v23  ;;  %v377_v38 = vld [vmem:[#allocation8 + $0x70] sm:$0xff]  ;;  %v376_v39 = vld [vmem:[#allocation8 + $0x68] sm:$0xff]  ;;  %v375_v40 = vld [vmem:[#allocation8 + $0x60] sm:$0xff]  ;;  %s553_s26 = sshll.u32 %s872_s25, 4  ;;  %s554_s26 = int_to_ptr.vmem [resolvable:$true] %s553_s26 }
  0x44   :  { %118 = vbcast.lane.b32.xlu1 %v116_v6, 256  ;;  %625 = vmatpush3.msra.mxu0 %v253_v19  ;;  %v374_v41 = vld [vmem:[#allocation8 + $0x58] sm:$0xff]  ;;  %v373_v42 = vld [vmem:[#allocation8 + $0x50] sm:$0xff]  ;;  %v372_v43 = vld [vmem:[#allocation8 + $0x48] sm:$0xff]  ;;  %vm289_vm8 = vcmask 1047559   ;;  %s835_s27 = scalar_lea.vmem %s554_s26, 128  ;;  %p840_p12 = scmp.lt.s32.totalorder %s554_s26, %s554_s26 }
  0x45   :  { %626 = vmatprep.subr.mxu0 %v870_v11  ;;  %654 = vmatpush3.msra.mxu1 %v378_v37  ;;  %v371_v44 = vld [vmem:[#allocation8 + $0x40] sm:$0xff]  ;;  %v370_v45 = vld [vmem:[#allocation8 + $0x38] sm:$0xff]  ;;  %v369_v46 = vld [vmem:[#allocation8 + $0x30] sm:$0xff]  ;;  %p836_p11 = scmp.ne.s32.totalorder %s554_s26, %s835_s27  ;;  %p841_p13 = scmp.lt.s32.totalorder %s835_s27, %s835_s27 }
  0x46   :  { %627 = vmatpush3.msra.mxu0 %v252_v21  ;;  %655 = vmatprep.subr.mxu1 %v870_v11  ;;  %v368_v47 = vld [vmem:[#allocation8 + $0x28] sm:$0xff]  ;;  %v367_v48 = vld [vmem:[#allocation8 + $0x20] sm:$0xff]  ;;  %v366_v49 = vld [vmem:[#allocation8 + $0x18] sm:$0xff] }
  0x47   :  { %628 = vmatprep.subr.mxu0 %v870_v11  ;;  %656 = vmatpush3.msra.mxu1 %v377_v38  ;;  %v92_v53 = vld [vmem:[#allocation2 + $0x10] sm:$0xff]  ;;  %v90_v54 = vld [vmem:[#allocation2] sm:$0xff]  ;;  %v93_v55 = vld [vmem:[#allocation2 + $0x18] sm:$0xff]  ;;  %p842_p0 = por %p841_p13, %p840_p12 }
  0x48   :  { %104 = vbcast.lane.b32.xlu1 %v102_v7, 256  ;;  %629 = vmatpush3.msra.mxu0 %v251_v24  ;;  %v94_v57 = vld [vmem:[#allocation2 + $0x20] sm:$0xff]  ;;  %v95_v61 = vld [vmem:[#allocation2 + $0x28] sm:$0xff]  ;;  %v96_v4 = vld [vmem:[#allocation2 + $0x30] sm:$0xff] }
  0x49   :  { %630 = vmatprep.subr.mxu0 %v870_v11  ;;  %657 = vmatprep.subr.mxu1 %v870_v11  ;;  %v91_v18 = vld [vmem:[#allocation2 + $0x8] sm:$0xff]  ;;  %p843_p1 = pnand %p842_p0, %p836_p11 }
  0x4a   :  { %631 = vmatpush3.msra.mxu0 %v250_v26  ;;  %658 = vmatpush3.msra.mxu1 %v376_v39 }
  0x4b   :  { %632 = vmatprep.subr.mxu0 %v870_v11  ;;  %659 = vmatprep.subr.mxu1 %v870_v11 }
  0x4c   :  { %125 = vbcast.lane.b32.xlu1 %v123_v9, 256  ;;  %633 = vmatpush3.msra.mxu0 %v249_v28 }
  0x4d   :  { %634 = vmatprep.subr.mxu0 %v870_v11  ;;  %660 = vmatpush3.msra.mxu1 %v375_v40 }
  0x4e   :  { %635 = vmatpush3.msra.mxu0 %v248_v29  ;;  %661 = vmatprep.subr.mxu1 %v870_v11 }
  0x4f   :  { %636 = vmatprep.subr.mxu0 %v870_v11  ;;  %662 = vmatpush3.msra.mxu1 %v374_v41 }
  0x50   :  { %132 = vbcast.lane.b32.xlu1 %v130_v13, 256  ;;  %637 = vmatpush3.msra.mxu0 %v247_v30 }
  0x51   :  { %638 = vmatprep.subr.mxu0 %v870_v11  ;;  %663 = vmatprep.subr.mxu1 %v870_v11 }
  0x52   :  { %639 = vmatpush3.msra.mxu0 %v246_v31  ;;  %664 = vmatpush3.msra.mxu1 %v373_v42 }
  0x53   :  { %640 = vmatprep.subr.mxu0 %v870_v11  ;;  %665 = vmatprep.subr.mxu1 %v870_v11 }
  0x54   :  { %139 = vbcast.lane.b32.xlu1 %v137_v17, 256  ;;  %111 = vbcast.lane.b32.xlu0 %v109_v25, 256  ;;  %v97_v17 = vld [vmem:[#allocation2 + $0x38] sm:$0xff] }
  0x55   :  { %641 = vmatpush3.msra.mxu0 %v245_v32  ;;  %666 = vmatpush3.msra.mxu1 %v372_v43 }
  0x56   :  { %642 = vmatprep.subr.mxu0 %v870_v11  ;;  %667 = vmatprep.subr.mxu1 %v870_v11 }
  0x57   :  { %643 = vmatpush3.msra.mxu0 %v244_v33  ;;  %668 = vmatpush3.msra.mxu1 %v371_v44 }
  0x58   :  { %146 = vbcast.lane.b32.xlu1 %v144_v22, 256  ;;  %644 = vmatprep.subr.mxu0 %v870_v11 }
  0x59   :  { %645 = vmatpush3.msra.mxu0 %v243_v34  ;;  %669 = vmatprep.subr.mxu1 %v870_v11 }
  0x5a   :  { %646 = vmatprep.subr.mxu0 %v870_v11  ;;  %670 = vmatpush3.msra.mxu1 %v370_v45 }
  0x5b   :  { %647 = vmatpush3.msra.mxu0 %v242_v35  ;;  %671 = vmatprep.subr.mxu1 %v870_v11 }
  0x5c   :  { %153 = vbcast.lane.b32.xlu1 %v151_v27, 256  ;;  %648 = vmatprep.subr.mxu0 %v870_v11 }
  0x5d   :  { %649 = vmatpush3.msra.mxu0 %v241_v36  ;;  %672 = vmatpush3.msra.mxu1 %v369_v46 }
  0x5e   :  { %688 = vmatprep.subr.mxu0 %v870_v11  ;;  %673 = vmatprep.subr.mxu1 %v870_v11 }
  0x5f   :  { %674 = vmatpush3.msra.mxu1 %v368_v47 }
  0x60   :  { %675 = vmatprep.subr.mxu1 %v870_v11 }
  0x61   :  { %676 = vmatpush3.msra.mxu1 %v367_v48 }
  0x62   :  { %677 = vmatprep.subr.mxu1 %v870_v11 }
  0x63   :  { %678 = vmatpush3.msra.mxu1 %v366_v49 }
  0x64   :  { %679 = vmatprep.subr.mxu1 %v870_v11 }
  0xb6   :  { %v119_v50 = vpop.permute.xlu1 %118 }
  0xb7   :  { %v157_v58 = vmul.f32 %v119_v50, %v92_v53 }
  0xb9   :  { %v175_v0 = vrot.slane %v157_v58, 4 }
  0xba   :  { %v105_v51 = vpop.permute.xlu1 %104 }
  0xbb   :  { %v155_v59 = vmul.f32 %v105_v51, %v90_v54  ;;  %v176_v7 = vadd.f32 %v175_v0, %v157_v58 }
  0xbd   :  { %v163_v2 = vrot.slane %v155_v59, 4  ;;  %v177_v20 = vrot.slane %v176_v7, 2 }
  0xbe   :  { %v126_v52 = vpop.permute.xlu1 %125 }
  0xbf   :  { %v158_v60 = vmul.f32 %v126_v52, %v93_v55  ;;  %v164_v10 = vadd.f32 %v163_v2, %v155_v59  ;;  %v178_v30 = vadd.f32 %v177_v20, %v176_v7 }
  0xc1   :  { %v181_v3 = vrot.slane %v158_v60, 4  ;;  %v165_v22 = vrot.slane %v164_v10, 2  ;;  %v179_v40 = vrot.slane %v178_v30, 1 }
  0xc2   :  { %v133_v56 = vpop.permute.xlu1 %132 }
  0xc3   :  { %v159_v62 = vmul.f32 %v133_v56, %v94_v57  ;;  %v182_v12 = vadd.f32 %v181_v3, %v158_v60  ;;  %v166_v33 = vadd.f32 %v165_v22, %v164_v10  ;;  %v180_v53 = vadd.f32 %v179_v40, %v178_v30  ;;  %v363_v30 = vld [vmem:[#allocation8] sm:$0xff]  ;;  %v461_v40 = vld [vmem:[#allocation10 + $0x30] sm:$0xff] }
  0xc5   :  { %v187_v5 = vrot.slane %v159_v62, 4  ;;  %v183_v23 = vrot.slane %v182_v12, 2  ;;  %v167_v43 = vrot.slane %v166_v33, 1 }
  0xc6   :  { %v140_v63 = vpop.permute.xlu1 %139 }
  0xc7   :  { %v160_v1 = vmul.f32 %v140_v63, %v95_v61  ;;  %v214_v13 = vpop.xlane.xlu0 %213  ;;  %v188_v14 = vadd.f32 %v187_v5, %v159_v62  ;;  %v184_v34 = vadd.f32 %v183_v23, %v182_v12  ;;  %v168_v54 = vadd.f32 %v167_v43, %v166_v33  ;;  %v468_v33 = vld [vmem:[#allocation10 + $0x68] sm:$0xff]  ;;  %v458_v43 = vld [vmem:[#allocation10 + $0x18] sm:$0xff] }
  0xc8   :  { %v215_v15 = vmax.f32 %v214_v13, 1.0 }
  0xc9   :  { %v193_v8 = vrot.slane %v160_v1, 4  ;;  %v189_v27 = vrot.slane %v188_v14, 2  ;;  %v185_v44 = vrot.slane %v184_v34, 1 }
  0xca   :  { %v147_v6 = vpop.permute.xlu1 %146  ;;  %733 = vrcp.f32 %v215_v15 }
  0xcb   :  { %v161_v9 = vmul.f32 %v147_v6, %v96_v4  ;;  %v194_v21 = vadd.f32 %v193_v8, %v160_v1  ;;  %v112_v25 = vpop.permute.xlu0 %111  ;;  %v190_v37 = vadd.f32 %v189_v27, %v188_v14  ;;  %v186_v55 = vadd.f32 %v185_v44, %v184_v34  ;;  %v467_v34 = vld [vmem:[#allocation10 + $0x60] sm:$0xff]  ;;  %v564_v44 = vld [vmem:[%s1007_s5] ss:$0 sm:$0xff] }
  0xcc   :  { %v156_v28 = vmul.f32 %v112_v25, %v91_v18 }
  0xcd   :  { %v199_v16 = vrot.slane %v161_v9, 4  ;;  %v195_v31 = vrot.slane %v194_v21, 2  ;;  %v191_v47 = vrot.slane %v190_v37, 1 }
  0xce   :  { %v154_v19 = vpop.permute.xlu1 %153  ;;  %v169_v32 = vrot.slane %v156_v28, 4 }
  0xcf   :  { %v200_v24 = vadd.f32 %v199_v16, %v161_v9  ;;  %v162_v26 = vmul.f32 %v154_v19, %v97_v17  ;;  %v196_v41 = vadd.f32 %v195_v31, %v194_v21  ;;  %v192_v57 = vadd.f32 %v191_v47, %v190_v37  ;;  %v470_v31 = vld [vmem:[#allocation10 + $0x78] sm:$0xff]  ;;  %v464_v37 = vld [vmem:[#allocation10 + $0x48] sm:$0xff] }
  0xd0   :  { %v170_v38 = vadd.f32 %v169_v32, %v156_v28  ;;  %v365_v28 = vld [vmem:[#allocation8 + $0x10] sm:$0xff] }
  0xd1   :  { %v205_v29 = vrot.slane %v162_v26, 4  ;;  %v201_v35 = vrot.slane %v200_v24, 2  ;;  %v197_v49 = vrot.slane %v196_v41, 1  ;;  %680 = vmatpush3.msra.mxu1 %v365_v28  ;;  %v469_v32 = vld [vmem:[#allocation10 + $0x70] sm:$0xff] }
  0xd2   :  { %v171_v42 = vrot.slane %v170_v38, 2  ;;  %681 = vmatprep.subr.mxu1 %v870_v11 }
  0xd3   :  { %v206_v36 = vadd.f32 %v205_v29, %v162_v26  ;;  %v202_v45 = vadd.f32 %v201_v35, %v200_v24  ;;  %v198_v1 = vadd.f32 %v197_v49, %v196_v41  ;;  %v364_v29 = vld [vmem:[#allocation8 + $0x8] sm:$0xff]  ;;  %v466_v35 = vld [vmem:[#allocation10 + $0x58] sm:$0xff]  ;;  %v457_v49 = vld [vmem:[#allocation10 + $0x10] sm:$0xff] }
  0xd4   :  { %v172_v48 = vadd.f32 %v171_v42, %v170_v38  ;;  %682 = vmatpush3.msra.mxu1 %v364_v29  ;;  %v463_v38 = vld [vmem:[#allocation10 + $0x40] sm:$0xff]  ;;  %v460_v41 = vld [vmem:[#allocation10 + $0x28] sm:$0xff] }
  0xd5   :  { %v207_v39 = vrot.slane %v206_v36, 2  ;;  %v203_v56 = vrot.slane %v202_v45, 1  ;;  %683 = vmatprep.subr.mxu1 %v870_v11  ;;  %v459_v42 = vld [vmem:[#allocation10 + $0x20] sm:$0xff] }
  0xd6   :  { %v173_v50 = vrot.slane %v172_v48, 1  ;;  %684 = vmatpush3.msra.mxu1 %v363_v30 }
  0xd7   :  { %v208_v46 = vadd.f32 %v207_v39, %v206_v36  ;;  %v734_v52 = vpop.eup %733  ;;  %v204_v5 = vadd.f32 %v203_v56, %v202_v45  ;;  %v465_v36 = vld [vmem:[#allocation10 + $0x50] sm:$0xff]  ;;  %v462_v39 = vld [vmem:[#allocation10 + $0x38] sm:$0xff] }
  0xd8   :  { %v223_v58 = vrot.slane %v734_v52, 6  ;;  %v218_v59 = vrot.slane %v734_v52, 1  ;;  %v174_v60 = vadd.f32 %v173_v50, %v172_v48  ;;  %v219_v61 = vrot.slane %v734_v52, 2  ;;  %v456_v50 = vld [vmem:[#allocation10 + $0x8] sm:$0xff] }
  0xd9   :  { %v209_v51 = vrot.slane %v208_v46, 1  ;;  %v220_v62 = vrot.slane %v734_v52, 3  ;;  %v221_v63 = vrot.slane %v734_v52, 4  ;;  %v222_v0 = vrot.slane %v734_v52, 5 }
  0xda   :  { %v234_v2 = vmul.f32 %v218_v59, %v174_v60  ;;  %v224_v4 = vrot.slane %v734_v52, 7  ;;  %v235_v6 = vmul.f32 %v219_v61, %v180_v53  ;;  %v233_v9 = vmul.f32 %v734_v52, %v168_v54  ;;  %v565_v52 = vld [vmem:[%s1007_s5 + $0x1] ss:$0 sm:$0xff] }
  0xdb   :  { %v210_v3 = vadd.f32 %v209_v51, %v208_v46  ;;  %v236_v7 = vmul.f32 %v220_v62, %v186_v55  ;;  %v237_v8 = vmul.f32 %v221_v63, %v192_v57  ;;  %v238_v12 = vmul.f32 %v222_v0, %v198_v1  ;;  %v455_v51 = vld [vmem:[#allocation10] sm:$0xff]  ;;  %v566_v57 = vld [vmem:[%s1007_s5 + $0x2] ss:$0 sm:$0xff] }
  0xdc   :  { %v270_v10 = vrot.slane %v234_v2, 7  ;;  %v239_v13 = vmul.f32 %v223_v58, %v204_v5  ;;  %v273_v14 = vrot.slane %v235_v6, 6 }
  0xdd   :  { %v240_v16 = vmul.f32 %v224_v4, %v210_v3  ;;  %v276_v17 = vrot.slane %v236_v7, 5  ;;  %v279_v19 = vrot.slane %v237_v8, 4  ;;  %v282_v21 = vrot.slane %v238_v12, 3 }
  0xde   :  { %v272_v15 = vsel %vm271_vm2, %v270_v10, %v233_v9  ;;  %v285_v23 = vrot.slane %v239_v13, 2 }
  0xdf   :  { %v275_v18 = vsel %vm274_vm3, %v273_v14, %v272_v15  ;;  %v288_v25 = vrot.slane %v240_v16, 1 }
  0xe0   :  { %v278_v20 = vsel %vm277_vm4, %v276_v17, %v275_v18 }
  0xe1   :  { %v281_v22 = vsel %vm280_vm5, %v279_v19, %v278_v20 }
  0xe2   :  { %v284_v24 = vsel %vm283_vm6, %v282_v21, %v281_v22 }
  0xe3   :  { %v287_v26 = vsel %vm286_vm7, %v285_v23, %v284_v24 }
  0xe4   :  { %v290_v27 = vsel %vm289_vm8, %v288_v25, %v287_v26 }
  0xe5   :  { %651 = vmatmul.mubr.f32.vlgmr.msra.gmra.mxu0 %v290_v27 }
  0xe6   :  { %720 = vmatprep.mubr.msk.f32.mxu0 %vm871_vm1, %v870_v11  ;;  %689 = vmatpush3.msra.mxu0 %v470_v31 }
  0xe7   :  { %690 = vmatprep.subr.mxu0 %v870_v11 }
  0xe8   :  { %691 = vmatpush3.msra.mxu0 %v469_v32 }
  0xe9   :  { %692 = vmatprep.subr.mxu0 %v870_v11 }
  0xea   :  { %693 = vmatpush3.msra.mxu0 %v468_v33 }
  0xeb   :  { %694 = vmatprep.subr.mxu0 %v870_v11 }
  0xec   :  { %695 = vmatpush3.msra.mxu0 %v467_v34 }
  0xed   :  { %696 = vmatprep.subr.mxu0 %v870_v11 }
  0xee   :  { %697 = vmatpush3.msra.mxu0 %v466_v35 }
  0xef   :  { %698 = vmatprep.subr.mxu0 %v870_v11 }
  0xf0   :  { %699 = vmatpush3.msra.mxu0 %v465_v36 }
  0xf1   :  { %700 = vmatprep.subr.mxu0 %v870_v11 }
  0xf2   :  { %701 = vmatpush3.msra.mxu0 %v464_v37 }
  0xf3   :  { %702 = vmatprep.subr.mxu0 %v870_v11 }
  0xf4   :  { %703 = vmatpush3.msra.mxu0 %v463_v38 }
  0xf5   :  { %704 = vmatprep.subr.mxu0 %v870_v11 }
  0xf6   :  { %705 = vmatpush3.msra.mxu0 %v462_v39 }
  0xf7   :  { %706 = vmatprep.subr.mxu0 %v870_v11 }
  0xf8   :  { %707 = vmatpush3.msra.mxu0 %v461_v40 }
  0xf9   :  { %708 = vmatprep.subr.mxu0 %v870_v11 }
  0xfa   :  { %709 = vmatpush3.msra.mxu0 %v460_v41 }
  0xfb   :  { %710 = vmatprep.subr.mxu0 %v870_v11 }
  0xfc   :  { %711 = vmatpush3.msra.mxu0 %v459_v42 }
  0xfd   :  { %712 = vmatprep.subr.mxu0 %v870_v11 }
  0xfe   :  { %713 = vmatpush3.msra.mxu0 %v458_v43 }
  0xff   :  { %714 = vmatprep.subr.mxu0 %v870_v11 }
 0x100   :  { %715 = vmatpush3.msra.mxu0 %v457_v49 }
 0x101   :  { %716 = vmatprep.subr.mxu0 %v870_v11 }
 0x102   :  { %717 = vmatpush3.msra.mxu0 %v456_v50 }
 0x103   :  { %718 = vmatprep.subr.mxu0 %v870_v11 }
 0x104   :  { %719 = vmatpush3.msra.mxu0 %v455_v51 }
 0x1a5   :  { %v358_v45 = vpop.f32.mrf.mxu0 }
 0x1a6   :  { %v359_v46 = vadd.f32 %v564_v44, %v358_v45 }
 0x1a7   :  { %v652_v47 = vpop.f32.mrf.mxu0 }
 0x1a8   :  { %v362_v48 = vmax.f32 %v359_v46, 0.0 }
 0x1aa   :  { %686 = vmatmul.mubr.f32.vlgmr.msra.gmra.mxu1 %v362_v48 }
 0x26a   :  { %v450_v53 = vpop.f32.mrf.mxu1 }
 0x26b   :  { %v451_v54 = vadd.f32 %v565_v52, %v450_v53 }
 0x26c   :  { %v687_v55 = vpop.f32.mrf.mxu1 }
 0x26d   :  { %v454_v56 = vmax.f32 %v451_v54, 0.0 }
 0x26f   :  { %721 = vmatmul.mubr.f32.vlgmr.msra.gmra.mxu0 %v454_v56 }
 0x32f   :  { %v542_v58 = vpop.f32.mrf.mxu0 }
 0x330   :  { %v543_v59 = vadd.f32 %v566_v57, %v542_v58 }
 0x331   :  { %v722_v11 = vpop.f32.mrf.mxu0 }
 0x332   :  { %546 = vst [vmem:[#allocation11] sm:$0xff] %v543_v59 }
 0x333   :  { %846 = shalt.err (!%p843_p1)
}
 0x334   :  { %556 = dma.vmem_to_hbm [thread:$0]  %s554_s26, 128, %s1008_s6, [#allocation4]  }
 0x335   :  { %861 = dma.done.wait [#allocation4], 128  }
 0x336   :  { %862 = vsyncadd [#allocation4], 4294967168 }
 0x337   :  { %560 = vsyncpa [#allocation3], 1 }
 0x338   :  { %561 = vsyncpa [#allocation6], 1 }
 0x339   :  { %562 = vsyncpa [#allocation9], 1 }
 0x33a   :  { %563 = vsyncpa [#allocation4], 1 }

</bundles_post_ra>
